<compile_context>
chip_gen: v5e
topology: v5e:2x2
jax: 0.10.0
libtpu: 0.0.40
codegen_flags: <defaults>
</compile_context>

<pallas_src>
import functools
import math

import jax
import jax.numpy as jnp
from jax.experimental import pallas as pl
from jax.experimental.pallas import tpu as pltpu

EPS = 1e-5
LANES = 128
BF16_SUBLANES = 16  # bf16 packs 16 sublanes per vreg


def _round_up(n, m):
    return ((n + m - 1) // m) * m


def _pad2(a, rows, cols):
    return jnp.pad(a, ((0, rows - a.shape[0]), (0, cols - a.shape[1])))


def _vmem_cap_bytes():
    """~75% of physical VMEM (v5e/v6e: 128 MiB, v7x: 64 MiB)."""
    try:
        cap = int(pltpu.get_tpu_info().vmem_capacity_bytes)
    except Exception:
        cap = 64 * 1024 * 1024  # conservative (v7x) default
    return (cap * 3) // 4


# --------------------------------------------------------------------------
# Kernel
# --------------------------------------------------------------------------
def _make_kernel(b_real, b_pad, hw):
    inv_b = 1.0 / b_real
    inv_hw = 1.0 / hw

    def bn_train(h, gamma, beta, mask):
        """BatchNorm1d, training mode (batch mean, biased var, eps=1e-5).

        Stats are f32 cross-sublane (XLU) reductions -- no f32-operand MXU
        matmuls -- and the numerically safe sum((x-mu)^2) variance form is
        kept (E[x^2]-mu^2 would shorten the chain but risks cancellation).
        Padded batch rows are masked out of the statistics.
        """
        hm = h if mask is None else jnp.where(mask, h, 0.0)
        mu = jnp.sum(hm, axis=0, keepdims=True) * inv_b          # (1, F)
        d = h - mu
        dm = d if mask is None else jnp.where(mask, d, 0.0)
        var = jnp.sum(dm * dm, axis=0, keepdims=True) * inv_b    # (1, F)
        s = jax.lax.rsqrt(var + EPS)                             # EUP slot
        if gamma is None:                                        # affine=False
            return d * s
        return d * (s * gamma) + beta                            # fused scale+shift

    def kernel(x_ref, wnet_ref,
               w1_ref, g1_ref, b1_ref,
               w2_ref, g2_ref, b2_ref,
               w3_ref,
               w4_ref, g4_ref, b4_ref,
               w5_ref, b5_ref,
               emb_ref, py_ref):
        if b_pad > b_real:
            rows = jax.lax.broadcasted_iota(jnp.int32, (b_pad, 1), 0)
            mask = rows < b_real
        else:
            mask = None

        # ---- backbone stand-in: global average pool (f32 XLU lane reduce)
        #      + bias-free Linear (bf16 MXU, f32 accumulation) ----
        # TODO(synk): plug a real conv backbone here for `self.net`.
        pooled = jnp.sum(x_ref[...], axis=-1) * inv_hw            # (B, C) f32
        x = jnp.dot(pooled.astype(jnp.bfloat16), wnet_ref[...],
                    preferred_element_type=jnp.float32)           # (B, Dp)

        # ---- projection head ----
        h = jnp.dot(x.astype(jnp.bfloat16), w1_ref[...],
                    preferred_element_type=jnp.float32)           # (B, Hp)
        h = jnp.maximum(bn_train(h, g1_ref[...], b1_ref[...], mask), 0.0)

        h = jnp.dot(h.astype(jnp.bfloat16), w2_ref[...],
                    preferred_element_type=jnp.float32)           # (B, Hp)
        h = jnp.maximum(bn_train(h, g2_ref[...], b2_ref[...], mask), 0.0)

        h = jnp.dot(h.astype(jnp.bfloat16), w3_ref[...],
                    preferred_element_type=jnp.float32)           # (B, Pp)
        emb = bn_train(h, None, None, mask)                       # affine=False
        emb_ref[...] = emb.astype(emb_ref.dtype)

        # ---- pfc predictor ----
        p = jnp.dot(emb.astype(jnp.bfloat16), w4_ref[...],
                    preferred_element_type=jnp.float32)           # (B, Rp)
        p = jnp.maximum(bn_train(p, g4_ref[...], b4_ref[...], mask), 0.0)

        p = jnp.dot(p.astype(jnp.bfloat16), w5_ref[...],
                    preferred_element_type=jnp.float32) + b5_ref[...]
        py_ref[...] = p.astype(py_ref.dtype)

    return kernel


# --------------------------------------------------------------------------
# Parameters
# --------------------------------------------------------------------------
def init_params(key, c_in, dim_in, hidden_mlp, pred_dim, pseudo):
    """Deterministic synthetic parameter init (not a checkpoint load)."""
    ks = jax.random.split(key, 6)
    scale = 0.05
    f32 = jnp.float32
    return dict(
        wnet=scale * jax.random.normal(ks[0], (c_in, dim_in), f32),
        w1=scale * jax.random.normal(ks[1], (dim_in, hidden_mlp), f32),
        g1=jnp.ones((1, hidden_mlp), f32), b1=jnp.zeros((1, hidden_mlp), f32),
        w2=scale * jax.random.normal(ks[2], (hidden_mlp, hidden_mlp), f32),
        g2=jnp.ones((1, hidden_mlp), f32), b2=jnp.zeros((1, hidden_mlp), f32),
        w3=scale * jax.random.normal(ks[3], (hidden_mlp, pseudo), f32),
        w4=scale * jax.random.normal(ks[4], (pseudo, pred_dim), f32),
        g4=jnp.ones((1, pred_dim), f32), b4=jnp.zeros((1, pred_dim), f32),
        w5=scale * jax.random.normal(ks[5], (pred_dim, pseudo), f32),
        b5=jnp.zeros((1, pseudo), f32),
    )


def prepare_params(params):
    """ONE-TIME parameter prep, hoisted out of the per-step forward.

    Zero-pads every feature width up to a multiple of 128 lanes (lane-dense
    matmuls / unmasked vst) and casts matmul weights to bf16.  Zero-padded
    columns provably stay exactly zero through (bias-free Linear -> BN ->
    ReLU), so the wrapper just slices them off.
    """
    c_in, dim_in = params["wnet"].shape
    hidden = params["w1"].shape[1]
    pseudo = params["w3"].shape[1]
    pred = params["w4"].shape[1]
    din_p, hid_p, pse_p, prd_p = (_round_up(d, LANES)
                                  for d in (dim_in, hidden, pseudo, pred))
    bf16 = jnp.bfloat16
    prepped = dict(
        wnet=_pad2(params["wnet"], c_in, din_p).astype(bf16),
        w1=_pad2(params["w1"], din_p, hid_p).astype(bf16),
        g1=_pad2(params["g1"], 1, hid_p), b1=_pad2(params["b1"], 1, hid_p),
        w2=_pad2(params["w2"], hid_p, hid_p).astype(bf16),
        g2=_pad2(params["g2"], 1, hid_p), b2=_pad2(params["b2"], 1, hid_p),
        w3=_pad2(params["w3"], hid_p, pse_p).astype(bf16),
        w4=_pad2(params["w4"], pse_p, prd_p).astype(bf16),
        g4=_pad2(params["g4"], 1, prd_p), b4=_pad2(params["b4"], 1, prd_p),
        w5=_pad2(params["w5"], prd_p, pse_p).astype(bf16),
        b5=_pad2(params["b5"], 1, pse_p),
    )
    dims = dict(dim_in=dim_in, hidden=hidden, pseudo=pseudo, pred=pred,
                din_p=din_p, hid_p=hid_p, pse_p=pse_p, prd_p=prd_p)
    return prepped, dims


# --------------------------------------------------------------------------
# Reference / fallback (plain XLA)
# --------------------------------------------------------------------------
def _reference_forward(x1, params):
    """Pure-JAX f32 mirror of the module math (backbone = GAP + Linear)."""
    B, C = x1.shape[0], x1.shape[1]

    def bn(h, gamma=None, beta=None):
        mu = jnp.mean(h, axis=0, keepdims=True)
        var = jnp.mean((h - mu) ** 2, axis=0, keepdims=True)
        out = (h - mu) * jax.lax.rsqrt(var + EPS)
        return out if gamma is None else out * gamma + beta

    pooled = jnp.mean(x1.reshape(B, C, -1), axis=-1)
    x = pooled @ params["wnet"]
    h = jnp.maximum(bn(x @ params["w1"], params["g1"], params["b1"]), 0.0)
    h = jnp.maximum(bn(h @ params["w2"], params["g2"], params["b2"]), 0.0)
    emb = bn(h @ params["w3"])
    p = jnp.maximum(bn(emb @ params["w4"], params["g4"], params["b4"]), 0.0)
    py = p @ params["w5"] + params["b5"]
    return jax.lax.stop_gradient(emb), py


def _xla_fallback(x1, prepped, dims):
    # TODO(synk): production shapes (hidden_mlp=2048, pseudo=3000, large B)
    # need a per-layer / B-tiled Pallas path (weights-resident BlockSpecs,
    # two-pass BN with accumulated stats, "parallel" batch axis for v7x
    # megacore).  Plain XLA keeps correctness meanwhile.
    f32 = lambda a: a.astype(jnp.float32)
    raw = dict(
        wnet=f32(prepped["wnet"]), w1=f32(prepped["w1"]),
        g1=prepped["g1"], b1=prepped["b1"],
        w2=f32(prepped["w2"]), g2=prepped["g2"], b2=prepped["b2"],
        w3=f32(prepped["w3"]), w4=f32(prepped["w4"]),
        g4=prepped["g4"], b4=prepped["b4"],
        w5=f32(prepped["w5"]), b5=prepped["b5"],
    )
    emb, py = _reference_forward(x1, raw)
    pse = dims["pseudo"]
    return emb[:, :pse], py[:, :pse]


# --------------------------------------------------------------------------
# Forward (jit this; parameter prep must already be done)
# --------------------------------------------------------------------------
def phead_with_pseudo_forward(x1, prepped, dims):
    """x1: (B, C, H, W) NCHW f32.  Returns (emb1_detached, py1), (B, pseudo)."""
    B, C, H, W = x1.shape
    hw = H * W
    pseudo, pse_p = dims["pseudo"], dims["pse_p"]

    # Pad the batch so bf16 matmul operands fill whole (16,128) vregs; padded
    # rows are masked out of BN statistics in the kernel and sliced off here.
    b_pad = max(_round_up(B, BF16_SUBLANES), BF16_SUBLANES)

    # x stays f32 (pool runs in f32 inside the kernel).
    # TODO(synk): pass x as bf16 only if the cast can fuse into the upstream
    # producer (don't add a standalone cast op).
    x = x1.reshape(B, C, hw)
    if b_pad != B:
        x = jnp.pad(x, ((0, b_pad - B), (0, 0), (0, 0)))

    ordered = (x, prepped["wnet"],
               prepped["w1"], prepped["g1"], prepped["b1"],
               prepped["w2"], prepped["g2"], prepped["b2"],
               prepped["w3"],
               prepped["w4"], prepped["g4"], prepped["b4"],
               prepped["w5"], prepped["b5"])

    out_shapes = (jax.ShapeDtypeStruct((b_pad, pse_p), jnp.float32),
                  jax.ShapeDtypeStruct((b_pad, pse_p), jnp.float32))

    # ---- VMEM budget: size the limit from the actual buffers (+ headroom),
    #      cap at ~75% of physical, and gate the all-resident path on it. ----
    in_bytes = sum(int(a.size) * a.dtype.itemsize for a in ordered)
    out_bytes = sum(math.prod(s.shape) * jnp.dtype(s.dtype).itemsize
                    for s in out_shapes)
    act_bytes = 4 * b_pad * (dims["din_p"] + 2 * dims["hid_p"]
                             + 2 * dims["pse_p"] + dims["prd_p"])
    needed = in_bytes + out_bytes + act_bytes
    cap = _vmem_cap_bytes()
    if needed > cap:
        return _xla_fallback(x1, prepped, dims)
    vmem_limit = min(cap, max(int(needed * 1.5), 16 * 1024 * 1024))

    flops = (2 * b_pad * (C * dims["din_p"]
                          + dims["din_p"] * dims["hid_p"]
                          + dims["hid_p"] * dims["hid_p"]
                          + dims["hid_p"] * dims["pse_p"]
                          + dims["pse_p"] * dims["prd_p"]
                          + dims["prd_p"] * dims["pse_p"])
             + b_pad * C * hw                                     # avg pool
             + 8 * b_pad * (2 * dims["hid_p"] + dims["pse_p"] + dims["prd_p"]))
    transcendentals = 2 * dims["hid_p"] + dims["pse_p"] + dims["prd_p"]

    vmem_spec = pl.BlockSpec(memory_space=pltpu.MemorySpace.VMEM)
    kernel = _make_kernel(B, b_pad, hw)

    emb_p, py_p = pl.pallas_call(
        kernel,
        out_shape=out_shapes,
        in_specs=[vmem_spec] * len(ordered),
        out_specs=(vmem_spec, vmem_spec),
        compiler_params=pltpu.CompilerParams(vmem_limit_bytes=vmem_limit),
        cost_estimate=pl.CostEstimate(
            flops=flops,
            transcendentals=transcendentals,
            bytes_accessed=in_bytes + out_bytes,
        ),
    )(*ordered)

    emb1 = emb_p[:B, :pseudo]
    py1 = py_p[:B, :pseudo]
    # emb1.detach() -> stop_gradient (forward values identical).
    return jax.lax.stop_gradient(emb1), py1


if __name__ == "__main__":
    # Small shapes consistent with the module's structure.
    B, C, H, W = 8, 4, 8, 8
    DIM_IN, HIDDEN_MLP, PRED_DIM, PSEUDO = 32, 32, 16, 24

    key = jax.random.PRNGKey(0)
    k_x, k_p = jax.random.split(key)
    x1 = jax.random.normal(k_x, (B, C, H, W), jnp.float32)
    params = init_params(k_p, C, DIM_IN, HIDDEN_MLP, PRED_DIM, PSEUDO)

    # One-time parameter prep (padding + bf16 cast) -- NOT in the step path.
    prepped, dims = prepare_params(params)

    fwd = jax.jit(functools.partial(phead_with_pseudo_forward, dims=dims))
    emb1, py1 = fwd(x1, prepped)
    jax.block_until_ready((emb1, py1))

    assert emb1.shape == (B, PSEUDO) and py1.shape == (B, PSEUDO)
    assert bool(jnp.all(jnp.isfinite(emb1))) and bool(jnp.all(jnp.isfinite(py1)))

    # Loose check vs f32 XLA reference (bf16 MXU matmuls => ~1% differences).
    emb_ref, py_ref = _reference_forward(x1, params)
    max_err = max(float(jnp.max(jnp.abs(emb1 - emb_ref))),
                  float(jnp.max(jnp.abs(py1 - py_ref))))
    assert max_err < 1e-1, f"mismatch vs f32 reference: {max_err}"

    print("KERNEL_OK")
</pallas_src>

<mosaic_0001>
module attributes {stable_mosaic.version = 11 : i64} {
  func.func @kernel(%arg0: memref<16x4x64xf32, #tpu.memory_space<vmem>>, %arg1: memref<4x128xbf16, #tpu.memory_space<vmem>>, %arg2: memref<128x128xbf16, #tpu.memory_space<vmem>>, %arg3: memref<1x128xf32, #tpu.memory_space<vmem>>, %arg4: memref<1x128xf32, #tpu.memory_space<vmem>>, %arg5: memref<128x128xbf16, #tpu.memory_space<vmem>>, %arg6: memref<1x128xf32, #tpu.memory_space<vmem>>, %arg7: memref<1x128xf32, #tpu.memory_space<vmem>>, %arg8: memref<128x128xbf16, #tpu.memory_space<vmem>>, %arg9: memref<128x128xbf16, #tpu.memory_space<vmem>>, %arg10: memref<1x128xf32, #tpu.memory_space<vmem>>, %arg11: memref<1x128xf32, #tpu.memory_space<vmem>>, %arg12: memref<128x128xbf16, #tpu.memory_space<vmem>>, %arg13: memref<1x128xf32, #tpu.memory_space<vmem>>, %arg14: memref<16x128xf32, #tpu.memory_space<vmem>>, %arg15: memref<16x128xf32, #tpu.memory_space<vmem>>) attributes {dimension_semantics = [], scalar_prefetch = 0 : i64, scratch_operands = 0 : i64, tpu.core_type = #tpu.core_type<tc>} {
    %0 = tpu.iota {dimensions = array<i32: 0>} : vector<16x1xi32>
    %c8_i32 = arith.constant 8 : i32
    %1 = vector.broadcast %c8_i32 : i32 to vector<16x1xi32>
    %2 = arith.cmpi slt, %0, %1 : vector<16x1xi32>
    %c0 = arith.constant 0 : index
    %c0_0 = arith.constant 0 : index
    %c0_1 = arith.constant 0 : index
    %3 = vector.load %arg0[%c0, %c0_0, %c0_1] : memref<16x4x64xf32, #tpu.memory_space<vmem>>, vector<16x4x64xf32>
    %cst = arith.constant dense<0.000000e+00> : vector<16x4xf32>
    %4 = vector.multi_reduction <add>, %3, %cst [2] : vector<16x4x64xf32> to vector<16x4xf32>
    %cst_2 = arith.constant 1.562500e-02 : f32
    %5 = vector.broadcast %cst_2 : f32 to vector<16x4xf32>
    %6 = arith.mulf %4, %5 : vector<16x4xf32>
    %7 = arith.truncf %6 : vector<16x4xf32> to vector<16x4xbf16>
    %c0_3 = arith.constant 0 : index
    %c0_4 = arith.constant 0 : index
    %8 = vector.load %arg1[%c0_3, %c0_4] : memref<4x128xbf16, #tpu.memory_space<vmem>>, vector<4x128xbf16>
    %cst_5 = arith.constant dense<0.000000e+00> : vector<16x128xf32>
    %9 = tpu.matmul %7, %8, %cst_5 {dimension_numbers = #tpu.dot_dimension_numbers<[1], [0], [0], [1], [0, 0, 1, 1], [], []>} : vector<16x4xbf16>, vector<4x128xbf16>, vector<16x128xf32> -> vector<16x128xf32>
    %10 = arith.truncf %9 : vector<16x128xf32> to vector<16x128xbf16>
    %c0_6 = arith.constant 0 : index
    %c0_7 = arith.constant 0 : index
    %11 = vector.load %arg2[%c0_6, %c0_7] : memref<128x128xbf16, #tpu.memory_space<vmem>>, vector<128x128xbf16>
    %cst_8 = arith.constant dense<0.000000e+00> : vector<16x128xf32>
    %12 = tpu.matmul %10, %11, %cst_8 {dimension_numbers = #tpu.dot_dimension_numbers<[1], [0], [0], [1], [0, 0, 1, 1], [], []>} : vector<16x128xbf16>, vector<128x128xbf16>, vector<16x128xf32> -> vector<16x128xf32>
    %c0_9 = arith.constant 0 : index
    %c0_10 = arith.constant 0 : index
    %13 = vector.load %arg3[%c0_9, %c0_10] : memref<1x128xf32, #tpu.memory_space<vmem>>, vector<1x128xf32>
    %c0_11 = arith.constant 0 : index
    %c0_12 = arith.constant 0 : index
    %14 = vector.load %arg4[%c0_11, %c0_12] : memref<1x128xf32, #tpu.memory_space<vmem>>, vector<1x128xf32>
    %cst_13 = arith.constant 0.000000e+00 : f32
    %15 = vector.shape_cast %2 : vector<16x1xi1> to vector<16x1xi1>
    %16 = vector.broadcast %15 : vector<16x1xi1> to vector<16x128xi1>
    %17 = vector.broadcast %cst_13 : f32 to vector<16x128xf32>
    %18 = arith.select %16, %12, %17 : vector<16x128xi1>, vector<16x128xf32>
    %cst_14 = arith.constant dense<0.000000e+00> : vector<128xf32>
    %19 = vector.multi_reduction <add>, %18, %cst_14 [0] : vector<16x128xf32> to vector<128xf32>
    %20 = vector.shape_cast %19 : vector<128xf32> to vector<1x128xf32>
    %cst_15 = arith.constant 1.250000e-01 : f32
    %21 = vector.broadcast %cst_15 : f32 to vector<1x128xf32>
    %22 = arith.mulf %20, %21 : vector<1x128xf32>
    %23 = vector.broadcast %22 : vector<1x128xf32> to vector<16x128xf32>
    %24 = arith.subf %12, %23 : vector<16x128xf32>
    %cst_16 = arith.constant 0.000000e+00 : f32
    %25 = vector.shape_cast %2 : vector<16x1xi1> to vector<16x1xi1>
    %26 = vector.broadcast %25 : vector<16x1xi1> to vector<16x128xi1>
    %27 = vector.broadcast %cst_16 : f32 to vector<16x128xf32>
    %28 = arith.select %26, %24, %27 : vector<16x128xi1>, vector<16x128xf32>
    %29 = arith.mulf %28, %28 : vector<16x128xf32>
    %cst_17 = arith.constant dense<0.000000e+00> : vector<128xf32>
    %30 = vector.multi_reduction <add>, %29, %cst_17 [0] : vector<16x128xf32> to vector<128xf32>
    %31 = vector.shape_cast %30 : vector<128xf32> to vector<1x128xf32>
    %cst_18 = arith.constant 1.250000e-01 : f32
    %32 = vector.broadcast %cst_18 : f32 to vector<1x128xf32>
    %33 = arith.mulf %31, %32 : vector<1x128xf32>
    %cst_19 = arith.constant 9.99999974E-6 : f32
    %34 = vector.broadcast %cst_19 : f32 to vector<1x128xf32>
    %35 = arith.addf %33, %34 : vector<1x128xf32>
    %36 = math.rsqrt %35 : vector<1x128xf32>
    %37 = arith.mulf %36, %13 : vector<1x128xf32>
    %38 = vector.broadcast %37 : vector<1x128xf32> to vector<16x128xf32>
    %39 = arith.mulf %24, %38 : vector<16x128xf32>
    %40 = vector.broadcast %14 : vector<1x128xf32> to vector<16x128xf32>
    %41 = arith.addf %39, %40 : vector<16x128xf32>
    %cst_20 = arith.constant 0.000000e+00 : f32
    %42 = vector.broadcast %cst_20 : f32 to vector<16x128xf32>
    %43 = arith.maximumf %41, %42 : vector<16x128xf32>
    %44 = arith.truncf %43 : vector<16x128xf32> to vector<16x128xbf16>
    %c0_21 = arith.constant 0 : index
    %c0_22 = arith.constant 0 : index
    %45 = vector.load %arg5[%c0_21, %c0_22] : memref<128x128xbf16, #tpu.memory_space<vmem>>, vector<128x128xbf16>
    %cst_23 = arith.constant dense<0.000000e+00> : vector<16x128xf32>
    %46 = tpu.matmul %44, %45, %cst_23 {dimension_numbers = #tpu.dot_dimension_numbers<[1], [0], [0], [1], [0, 0, 1, 1], [], []>} : vector<16x128xbf16>, vector<128x128xbf16>, vector<16x128xf32> -> vector<16x128xf32>
    %c0_24 = arith.constant 0 : index
    %c0_25 = arith.constant 0 : index
    %47 = vector.load %arg6[%c0_24, %c0_25] : memref<1x128xf32, #tpu.memory_space<vmem>>, vector<1x128xf32>
    %c0_26 = arith.constant 0 : index
    %c0_27 = arith.constant 0 : index
    %48 = vector.load %arg7[%c0_26, %c0_27] : memref<1x128xf32, #tpu.memory_space<vmem>>, vector<1x128xf32>
    %cst_28 = arith.constant 0.000000e+00 : f32
    %49 = vector.shape_cast %2 : vector<16x1xi1> to vector<16x1xi1>
    %50 = vector.broadcast %49 : vector<16x1xi1> to vector<16x128xi1>
    %51 = vector.broadcast %cst_28 : f32 to vector<16x128xf32>
    %52 = arith.select %50, %46, %51 : vector<16x128xi1>, vector<16x128xf32>
    %cst_29 = arith.constant dense<0.000000e+00> : vector<128xf32>
    %53 = vector.multi_reduction <add>, %52, %cst_29 [0] : vector<16x128xf32> to vector<128xf32>
    %54 = vector.shape_cast %53 : vector<128xf32> to vector<1x128xf32>
    %cst_30 = arith.constant 1.250000e-01 : f32
    %55 = vector.broadcast %cst_30 : f32 to vector<1x128xf32>
    %56 = arith.mulf %54, %55 : vector<1x128xf32>
    %57 = vector.broadcast %56 : vector<1x128xf32> to vector<16x128xf32>
    %58 = arith.subf %46, %57 : vector<16x128xf32>
    %cst_31 = arith.constant 0.000000e+00 : f32
    %59 = vector.shape_cast %2 : vector<16x1xi1> to vector<16x1xi1>
    %60 = vector.broadcast %59 : vector<16x1xi1> to vector<16x128xi1>
    %61 = vector.broadcast %cst_31 : f32 to vector<16x128xf32>
    %62 = arith.select %60, %58, %61 : vector<16x128xi1>, vector<16x128xf32>
    %63 = arith.mulf %62, %62 : vector<16x128xf32>
    %cst_32 = arith.constant dense<0.000000e+00> : vector<128xf32>
    %64 = vector.multi_reduction <add>, %63, %cst_32 [0] : vector<16x128xf32> to vector<128xf32>
    %65 = vector.shape_cast %64 : vector<128xf32> to vector<1x128xf32>
    %cst_33 = arith.constant 1.250000e-01 : f32
    %66 = vector.broadcast %cst_33 : f32 to vector<1x128xf32>
    %67 = arith.mulf %65, %66 : vector<1x128xf32>
    %cst_34 = arith.constant 9.99999974E-6 : f32
    %68 = vector.broadcast %cst_34 : f32 to vector<1x128xf32>
    %69 = arith.addf %67, %68 : vector<1x128xf32>
    %70 = math.rsqrt %69 : vector<1x128xf32>
    %71 = arith.mulf %70, %47 : vector<1x128xf32>
    %72 = vector.broadcast %71 : vector<1x128xf32> to vector<16x128xf32>
    %73 = arith.mulf %58, %72 : vector<16x128xf32>
    %74 = vector.broadcast %48 : vector<1x128xf32> to vector<16x128xf32>
    %75 = arith.addf %73, %74 : vector<16x128xf32>
    %cst_35 = arith.constant 0.000000e+00 : f32
    %76 = vector.broadcast %cst_35 : f32 to vector<16x128xf32>
    %77 = arith.maximumf %75, %76 : vector<16x128xf32>
    %78 = arith.truncf %77 : vector<16x128xf32> to vector<16x128xbf16>
    %c0_36 = arith.constant 0 : index
    %c0_37 = arith.constant 0 : index
    %79 = vector.load %arg8[%c0_36, %c0_37] : memref<128x128xbf16, #tpu.memory_space<vmem>>, vector<128x128xbf16>
    %cst_38 = arith.constant dense<0.000000e+00> : vector<16x128xf32>
    %80 = tpu.matmul %78, %79, %cst_38 {dimension_numbers = #tpu.dot_dimension_numbers<[1], [0], [0], [1], [0, 0, 1, 1], [], []>} : vector<16x128xbf16>, vector<128x128xbf16>, vector<16x128xf32> -> vector<16x128xf32>
    %cst_39 = arith.constant 0.000000e+00 : f32
    %81 = vector.shape_cast %2 : vector<16x1xi1> to vector<16x1xi1>
    %82 = vector.broadcast %81 : vector<16x1xi1> to vector<16x128xi1>
    %83 = vector.broadcast %cst_39 : f32 to vector<16x128xf32>
    %84 = arith.select %82, %80, %83 : vector<16x128xi1>, vector<16x128xf32>
    %cst_40 = arith.constant dense<0.000000e+00> : vector<128xf32>
    %85 = vector.multi_reduction <add>, %84, %cst_40 [0] : vector<16x128xf32> to vector<128xf32>
    %86 = vector.shape_cast %85 : vector<128xf32> to vector<1x128xf32>
    %cst_41 = arith.constant 1.250000e-01 : f32
    %87 = vector.broadcast %cst_41 : f32 to vector<1x128xf32>
    %88 = arith.mulf %86, %87 : vector<1x128xf32>
    %89 = vector.broadcast %88 : vector<1x128xf32> to vector<16x128xf32>
    %90 = arith.subf %80, %89 : vector<16x128xf32>
    %cst_42 = arith.constant 0.000000e+00 : f32
    %91 = vector.shape_cast %2 : vector<16x1xi1> to vector<16x1xi1>
    %92 = vector.broadcast %91 : vector<16x1xi1> to vector<16x128xi1>
    %93 = vector.broadcast %cst_42 : f32 to vector<16x128xf32>
    %94 = arith.select %92, %90, %93 : vector<16x128xi1>, vector<16x128xf32>
    %95 = arith.mulf %94, %94 : vector<16x128xf32>
    %cst_43 = arith.constant dense<0.000000e+00> : vector<128xf32>
    %96 = vector.multi_reduction <add>, %95, %cst_43 [0] : vector<16x128xf32> to vector<128xf32>
    %97 = vector.shape_cast %96 : vector<128xf32> to vector<1x128xf32>
    %cst_44 = arith.constant 1.250000e-01 : f32
    %98 = vector.broadcast %cst_44 : f32 to vector<1x128xf32>
    %99 = arith.mulf %97, %98 : vector<1x128xf32>
    %cst_45 = arith.constant 9.99999974E-6 : f32
    %100 = vector.broadcast %cst_45 : f32 to vector<1x128xf32>
    %101 = arith.addf %99, %100 : vector<1x128xf32>
    %102 = math.rsqrt %101 : vector<1x128xf32>
    %103 = vector.broadcast %102 : vector<1x128xf32> to vector<16x128xf32>
    %104 = arith.mulf %90, %103 : vector<16x128xf32>
    %c0_46 = arith.constant 0 : index
    %c0_47 = arith.constant 0 : index
    %105 = vector.load %arg14[%c0_46, %c0_47] : memref<16x128xf32, #tpu.memory_space<vmem>>, vector<16x128xf32>
    tpu.vector_store %arg14[%c0_46, %c0_47], %104 {strides = array<i32>} : memref<16x128xf32, #tpu.memory_space<vmem>>, vector<16x128xf32>,
    %106 = arith.truncf %104 : vector<16x128xf32> to vector<16x128xbf16>
    %c0_48 = arith.constant 0 : index
    %c0_49 = arith.constant 0 : index
    %107 = vector.load %arg9[%c0_48, %c0_49] : memref<128x128xbf16, #tpu.memory_space<vmem>>, vector<128x128xbf16>
    %cst_50 = arith.constant dense<0.000000e+00> : vector<16x128xf32>
    %108 = tpu.matmul %106, %107, %cst_50 {dimension_numbers = #tpu.dot_dimension_numbers<[1], [0], [0], [1], [0, 0, 1, 1], [], []>} : vector<16x128xbf16>, vector<128x128xbf16>, vector<16x128xf32> -> vector<16x128xf32>
    %c0_51 = arith.constant 0 : index
    %c0_52 = arith.constant 0 : index
    %109 = vector.load %arg10[%c0_51, %c0_52] : memref<1x128xf32, #tpu.memory_space<vmem>>, vector<1x128xf32>
    %c0_53 = arith.constant 0 : index
    %c0_54 = arith.constant 0 : index
    %110 = vector.load %arg11[%c0_53, %c0_54] : memref<1x128xf32, #tpu.memory_space<vmem>>, vector<1x128xf32>
    %cst_55 = arith.constant 0.000000e+00 : f32
    %111 = vector.shape_cast %2 : vector<16x1xi1> to vector<16x1xi1>
    %112 = vector.broadcast %111 : vector<16x1xi1> to vector<16x128xi1>
    %113 = vector.broadcast %cst_55 : f32 to vector<16x128xf32>
    %114 = arith.select %112, %108, %113 : vector<16x128xi1>, vector<16x128xf32>
    %cst_56 = arith.constant dense<0.000000e+00> : vector<128xf32>
    %115 = vector.multi_reduction <add>, %114, %cst_56 [0] : vector<16x128xf32> to vector<128xf32>
    %116 = vector.shape_cast %115 : vector<128xf32> to vector<1x128xf32>
    %cst_57 = arith.constant 1.250000e-01 : f32
    %117 = vector.broadcast %cst_57 : f32 to vector<1x128xf32>
    %118 = arith.mulf %116, %117 : vector<1x128xf32>
    %119 = vector.broadcast %118 : vector<1x128xf32> to vector<16x128xf32>
    %120 = arith.subf %108, %119 : vector<16x128xf32>
    %cst_58 = arith.constant 0.000000e+00 : f32
    %121 = vector.shape_cast %2 : vector<16x1xi1> to vector<16x1xi1>
    %122 = vector.broadcast %121 : vector<16x1xi1> to vector<16x128xi1>
    %123 = vector.broadcast %cst_58 : f32 to vector<16x128xf32>
    %124 = arith.select %122, %120, %123 : vector<16x128xi1>, vector<16x128xf32>
    %125 = arith.mulf %124, %124 : vector<16x128xf32>
    %cst_59 = arith.constant dense<0.000000e+00> : vector<128xf32>
    %126 = vector.multi_reduction <add>, %125, %cst_59 [0] : vector<16x128xf32> to vector<128xf32>
    %127 = vector.shape_cast %126 : vector<128xf32> to vector<1x128xf32>
    %cst_60 = arith.constant 1.250000e-01 : f32
    %128 = vector.broadcast %cst_60 : f32 to vector<1x128xf32>
    %129 = arith.mulf %127, %128 : vector<1x128xf32>
    %cst_61 = arith.constant 9.99999974E-6 : f32
    %130 = vector.broadcast %cst_61 : f32 to vector<1x128xf32>
    %131 = arith.addf %129, %130 : vector<1x128xf32>
    %132 = math.rsqrt %131 : vector<1x128xf32>
    %133 = arith.mulf %132, %109 : vector<1x128xf32>
    %134 = vector.broadcast %133 : vector<1x128xf32> to vector<16x128xf32>
    %135 = arith.mulf %120, %134 : vector<16x128xf32>
    %136 = vector.broadcast %110 : vector<1x128xf32> to vector<16x128xf32>
    %137 = arith.addf %135, %136 : vector<16x128xf32>
    %cst_62 = arith.constant 0.000000e+00 : f32
    %138 = vector.broadcast %cst_62 : f32 to vector<16x128xf32>
    %139 = arith.maximumf %137, %138 : vector<16x128xf32>
    %140 = arith.truncf %139 : vector<16x128xf32> to vector<16x128xbf16>
    %c0_63 = arith.constant 0 : index
    %c0_64 = arith.constant 0 : index
    %141 = vector.load %arg12[%c0_63, %c0_64] : memref<128x128xbf16, #tpu.memory_space<vmem>>, vector<128x128xbf16>
    %cst_65 = arith.constant dense<0.000000e+00> : vector<16x128xf32>
    %142 = tpu.matmul %140, %141, %cst_65 {dimension_numbers = #tpu.dot_dimension_numbers<[1], [0], [0], [1], [0, 0, 1, 1], [], []>} : vector<16x128xbf16>, vector<128x128xbf16>, vector<16x128xf32> -> vector<16x128xf32>
    %c0_66 = arith.constant 0 : index
    %c0_67 = arith.constant 0 : index
    %143 = vector.load %arg13[%c0_66, %c0_67] : memref<1x128xf32, #tpu.memory_space<vmem>>, vector<1x128xf32>
    %144 = vector.broadcast %143 : vector<1x128xf32> to vector<16x128xf32>
    %145 = arith.addf %142, %144 : vector<16x128xf32>
    %c0_68 = arith.constant 0 : index
    %c0_69 = arith.constant 0 : index
    %146 = vector.load %arg15[%c0_68, %c0_69] : memref<16x128xf32, #tpu.memory_space<vmem>>, vector<16x128xf32>
    tpu.vector_store %arg15[%c0_68, %c0_69], %145 {strides = array<i32>} : memref<16x128xf32, #tpu.memory_space<vmem>>, vector<16x128xf32>,
    return
  }
}

</mosaic_0001>

<bundles_post_ra>
// kernel: phead_with_pseudo_forward.1
= control target key start
LH: loop header
LB: loop body
LE: loop exit
PB: predicated region body
PF: predicated region fallthrough
CT: control target
= control target key end

     0   :  { %vm71_vm0 = vcmask 519168   ;;  %vm229_vm1 = vcmask 1041408   ;;  %v185_v53 = vlaneseq  ;;  %vm203_vm2 = vcmask 1041409   ;;  %s1382_s0 = inlined_call_operand.vmem [shape: f32[16,4,64], index: 0, kind: input, shape index: {}]   ;;  %s1383_s1 = inlined_call_operand.vmem [shape: bf16[4,128], index: 1, kind: input, shape index: {}]   ;;  %s1384_s2 = inlined_call_operand.vmem [shape: bf16[128,128], index: 2, kind: input, shape index: {}]   ;;  %s1385_s4 = inlined_call_operand.vmem [shape: f32[1,128], index: 4, kind: input, shape index: {}]   ;;  %s1386_s5 = inlined_call_operand.vmem [shape: bf16[128,128], index: 5, kind: input, shape index: {}]   ;;  %s1387_s3 = inlined_call_operand.vmem [shape: f32[1,128], index: 3, kind: input, shape index: {}]   ;;  %s1388_s7 = inlined_call_operand.vmem [shape: f32[1,128], index: 7, kind: input, shape index: {}]   ;;  %s1389_s8 = inlined_call_operand.vmem [shape: bf16[128,128], index: 8, kind: input, shape index: {}]   ;;  %s1390_s6 = inlined_call_operand.vmem [shape: f32[1,128], index: 6, kind: input, shape index: {}]   ;;  %s1391_s9 = inlined_call_operand.vmem [shape: bf16[128,128], index: 9, kind: input, shape index: {}]   ;;  %s1392_s14 = inlined_call_operand.vmem [shape: f32[16,128], index: 14, kind: output, shape index: {0}]   ;;  %s1393_s11 = inlined_call_operand.vmem [shape: f32[1,128], index: 11, kind: input, shape index: {}]   ;;  %s1394_s13 = inlined_call_operand.vmem [shape: f32[1,128], index: 13, kind: input, shape index: {}]   ;;  %s1395_s12 = inlined_call_operand.vmem [shape: bf16[128,128], index: 12, kind: input, shape index: {}]   ;;  %s1396_s10 = inlined_call_operand.vmem [shape: f32[1,128], index: 10, kind: input, shape index: {}]   ;;  %s1397_s15 = inlined_call_operand.vmem [shape: f32[16,128], index: 15, kind: output, shape index: {1}]  }
   0x1   :  { %v63_v0 = vld [vmem:[%s1382_s0 + $0x20] sm:$0xf]  ;;  %v57_v2 = vld [vmem:[%s1382_s0 + $0x8] sm:$0xf]  ;;  %v64_v6 = vld [vmem:[%s1382_s0 + $0x24] sm:$0xf] }
   0x2   :  { %v55_v1 = vld [vmem:[%s1382_s0] sm:$0xf]  ;;  %v96_v3 = vsel %vm71_vm0, %v63_v0, 0.0  ;;  %v78_v5 = vsel %vm71_vm0, %v57_v2, 0.0  ;;  %v56_v7 = vld [vmem:[%s1382_s0 + $0x4] sm:$0xf] }
   0x3   :  { %v72_v4 = vsel %vm71_vm0, %v55_v1, 0.0  ;;  %97 = vadd.xlane.f32.xlu1 %v96_v3  ;;  %79 = vadd.xlane.f32.xlu2 %v78_v5  ;;  %v65_v8 = vld [vmem:[%s1382_s0 + $0x28] sm:$0xf]  ;;  %v99_v9 = vsel %vm71_vm0, %v64_v6, 0.0  ;;  %v75_v10 = vsel %vm71_vm0, %v56_v7, 0.0  ;;  %v1011_v44 = vld [vmem:[%s1384_s2 + $0x38] sm:$0xff] }
   0x4   :  { %73 = vadd.xlane.f32.xlu0 %v72_v4  ;;  %v102_v11 = vsel %vm71_vm0, %v65_v8, 0.0  ;;  %v66_v12 = vld [vmem:[%s1382_s0 + $0x2c] sm:$0xf]  ;;  %v59_v14 = vld [vmem:[%s1382_s0 + $0x10] sm:$0xf]  ;;  %312 = vmatpush.bf16.msra.mxu1 %v1011_v44  ;;  %v1212_v2 = vand.u32 127, %v185_v53 }
   0x5   :  { %v58_v13 = vld [vmem:[%s1382_s0 + $0xc] sm:$0xf]  ;;  %v105_v15 = vsel %vm71_vm0, %v66_v12, 0.0  ;;  %v84_v17 = vsel %vm71_vm0, %v59_v14, 0.0  ;;  %v60_v18 = vld [vmem:[%s1382_s0 + $0x14] sm:$0xf] }
   0x6   :  { %v81_v16 = vsel %vm71_vm0, %v58_v13, 0.0  ;;  %v67_v19 = vld [vmem:[%s1382_s0 + $0x30] sm:$0xf]  ;;  %v68_v20 = vld [vmem:[%s1382_s0 + $0x34] sm:$0xf]  ;;  %v87_v21 = vsel %vm71_vm0, %v60_v18, 0.0 }
   0x7   :  { %v108_v22 = vsel %vm71_vm0, %v67_v19, 0.0  ;;  %v111_v23 = vsel %vm71_vm0, %v68_v20, 0.0  ;;  %v69_v24 = vld [vmem:[%s1382_s0 + $0x38] sm:$0xf]  ;;  %v62_v26 = vld [vmem:[%s1382_s0 + $0x1c] sm:$0xf] }
   0x8   :  { %v61_v25 = vld [vmem:[%s1382_s0 + $0x18] sm:$0xf]  ;;  %v114_v27 = vsel %vm71_vm0, %v69_v24, 0.0  ;;  %v93_v29 = vsel %vm71_vm0, %v62_v26, 0.0  ;;  %v70_v30 = vld [vmem:[%s1382_s0 + $0x3c] sm:$0xf] }
   0x9   :  { %v90_v28 = vsel %vm71_vm0, %v61_v25, 0.0  ;;  %v117_v31 = vsel %vm71_vm0, %v70_v30, 0.0  ;;  %v152_v38 = vld [vmem:[%s1383_s1] sm:$0x3]  ;;  %v1010_v47 = vld [vmem:[%s1384_s2 + $0x30] sm:$0xff]  ;;  %v1009_v59 = vld [vmem:[%s1384_s2 + $0x28] sm:$0xff] }
   0xa   :  { %v231_v41 = vsel %vm229_vm1, %v152_v38, 0  ;;  %313 = vmatpush.bf16.msra.mxu1 %v1010_v47  ;;  %v1008_v8 = vld [vmem:[%s1384_s2 + $0x20] sm:$0xff]  ;;  %vm205_vm3 = vcmask 1042434   ;;  %vm207_vm4 = vcmask 1043459   ;;  %vm209_vm5 = vcmask 1044484  }
   0xb   :  { %100 = vadd.xlane.f32.xlu1 %v99_v9  ;;  %103 = vadd.xlane.f32.xlu2 %v102_v11  ;;  %vm211_vm6 = vcmask 1045509   ;;  %vm213_vm7 = vcmask 1046534   ;;  %vm215_vm8 = vcmask 1047559   ;;  %vm225_vm9 = vcmask 31744  }
   0xc   :  { %76 = vadd.xlane.f32.xlu0 %v75_v10  ;;  %240 = vmatpush.bf16.msra.mxu0 %v231_v41 }
   0xe   :  { %314 = vmatpush.bf16.msra.mxu1 %v1009_v59 }
  0x12   :  { %315 = vmatpush.bf16.msra.mxu1 %v1008_v8 }
  0x13   :  { %106 = vadd.xlane.f32.xlu1 %v105_v15  ;;  %85 = vadd.xlane.f32.xlu2 %v84_v17 }
  0x14   :  { %82 = vadd.xlane.f32.xlu0 %v81_v16 }
  0x1b   :  { %88 = vadd.xlane.f32.xlu1 %v87_v21  ;;  %112 = vadd.xlane.f32.xlu2 %v111_v23 }
  0x1c   :  { %109 = vadd.xlane.f32.xlu0 %v108_v22 }
  0x23   :  { %115 = vadd.xlane.f32.xlu1 %v114_v27  ;;  %94 = vadd.xlane.f32.xlu2 %v93_v29  ;;  %v1007_v27 = vld [vmem:[%s1384_s2 + $0x18] sm:$0xff] }
  0x24   :  { %91 = vadd.xlane.f32.xlu0 %v90_v28  ;;  %316 = vmatpush.bf16.msra.mxu1 %v1007_v27  ;;  %v1015_v27 = vld [vmem:[%s1386_s5 + $0x18] sm:$0xff] }
  0x2c   :  { %118 = vadd.xlane.f32.xlu0 %v117_v31 }
  0x76   :  { %v98_v32 = vpop.xlane.xlu1 %97  ;;  %v80_v34 = vpop.xlane.xlu2 %79 }
  0x77   :  { %v74_v33 = vpop.xlane.xlu0 %73  ;;  %v128_v45 = vmul.f32 0.015625, %v98_v32  ;;  %v122_v49 = vmul.f32 0.015625, %v80_v34 }
  0x78   :  { %v120_v46 = vmul.f32 0.015625, %v74_v33 }
  0x79   :  { %v144_v56 = vpack.c.bf16 %v128_v45, %v128_v45  ;;  %v138_v62 = vpack.c.bf16 %v122_v49, %v122_v49 }
  0x7a   :  { %v136_v57 = vpack.c.bf16 %v120_v46, %v120_v46 }
  0x7b   :  { %v177_v5 = vunpack.c.l.b16 %v144_v56  ;;  %v171_v12 = vunpack.c.l.b16 %v138_v62 }
  0x7c   :  { %v169_v6 = vunpack.c.l.b16 %v136_v57 }
  0x7d   :  { %v195_v23 = vperm.slane %v177_v5, %v1212_v2  ;;  %v189_v32 = vperm.slane %v171_v12, %v1212_v2 }
  0x7e   :  { %v101_v35 = vpop.xlane.xlu1 %100  ;;  %v104_v37 = vpop.xlane.xlu2 %103  ;;  %v187_v24 = vperm.slane %v169_v6, %v1212_v2 }
  0x7f   :  { %v77_v36 = vpop.xlane.xlu0 %76  ;;  %v129_v48 = vmul.f32 0.015625, %v101_v35  ;;  %v130_v58 = vmul.f32 0.015625, %v104_v37 }
  0x80   :  { %v121_v43 = vmul.f32 0.015625, %v77_v36 }
  0x81   :  { %v145_v60 = vpack.c.bf16 %v129_v48, %v129_v48  ;;  %v146_v7 = vpack.c.bf16 %v130_v58, %v130_v58 }
  0x82   :  { %v137_v50 = vpack.c.bf16 %v121_v43, %v121_v43 }
  0x83   :  { %v178_v9 = vunpack.c.l.b16 %v145_v60  ;;  %v179_v25 = vunpack.c.l.b16 %v146_v7 }
  0x84   :  { %v170_v63 = vunpack.c.l.b16 %v137_v50 }
  0x85   :  { %v196_v28 = vperm.slane %v178_v9, %v1212_v2  ;;  %v1006_v9 = vld [vmem:[%s1384_s2 + $0x10] sm:$0xff] }
  0x86   :  { %v107_v39 = vpop.xlane.xlu1 %106  ;;  %v86_v42 = vpop.xlane.xlu2 %85  ;;  %v188_v13 = vperm.slane %v170_v63, %v1212_v2  ;;  %317 = vmatpush.bf16.msra.mxu1 %v1006_v9 }
  0x87   :  { %v83_v40 = vpop.xlane.xlu0 %82  ;;  %v131_v61 = vmul.f32 0.015625, %v107_v39  ;;  %v124_v0 = vmul.f32 0.015625, %v86_v42  ;;  %v217_v42 = vsel %vm203_vm2, %v196_v28, %v195_v23 }
  0x88   :  { %v123_v54 = vmul.f32 0.015625, %v83_v40  ;;  %v204_v36 = vsel %vm203_vm2, %v188_v13, %v187_v24  ;;  %v197_v40 = vperm.slane %v179_v25, %v1212_v2  ;;  %v1016_v24 = vld [vmem:[%s1386_s5 + $0x20] sm:$0xff] }
  0x89   :  { %v147_v10 = vpack.c.bf16 %v131_v61, %v131_v61  ;;  %v140_v14 = vpack.c.bf16 %v124_v0, %v124_v0  ;;  %v206_v45 = vsel %vm205_vm3, %v189_v32, %v204_v36 }
  0x8a   :  { %v139_v3 = vpack.c.bf16 %v123_v54, %v123_v54  ;;  %v218_v54 = vsel %vm205_vm3, %v197_v40, %v217_v42 }
  0x8b   :  { %v180_v29 = vunpack.c.l.b16 %v147_v10  ;;  %v173_v33 = vunpack.c.l.b16 %v140_v14  ;;  %v1005_v10 = vld [vmem:[%s1384_s2 + $0x8] sm:$0xff] }
  0x8c   :  { %v172_v18 = vunpack.c.l.b16 %v139_v3  ;;  %318 = vmatpush.bf16.msra.mxu1 %v1005_v10  ;;  %v1023_v10 = vld [vmem:[%s1389_s8 + $0x18] sm:$0xff] }
  0x8d   :  { %v198_v43 = vperm.slane %v180_v29, %v1212_v2  ;;  %v191_v46 = vperm.slane %v173_v33, %v1212_v2  ;;  %v1013_v33 = vld [vmem:[%s1386_s5 + $0x8] sm:$0xff] }
  0x8e   :  { %v89_v51 = vpop.xlane.xlu1 %88  ;;  %v113_v55 = vpop.xlane.xlu2 %112  ;;  %v190_v37 = vperm.slane %v172_v18, %v1212_v2  ;;  %v1018_v18 = vld [vmem:[%s1386_s5 + $0x30] sm:$0xff] }
  0x8f   :  { %v110_v52 = vpop.xlane.xlu0 %109  ;;  %v125_v4 = vmul.f32 0.015625, %v89_v51  ;;  %v133_v11 = vmul.f32 0.015625, %v113_v55  ;;  %v219_v56 = vsel %vm207_vm4, %v198_v43, %v218_v54 }
  0x90   :  { %v132_v1 = vmul.f32 0.015625, %v110_v52  ;;  %v208_v50 = vsel %vm207_vm4, %v190_v37, %v206_v45  ;;  %v326_v45 = vld [vmem:[%s1387_s3] sm:$0x1] }
  0x91   :  { %v141_v19 = vpack.c.bf16 %v125_v4, %v125_v4  ;;  %v149_v30 = vpack.c.bf16 %v133_v11, %v133_v11  ;;  %v210_v59 = vsel %vm209_vm5, %v191_v46, %v208_v50 }
  0x92   :  { %v148_v15 = vpack.c.bf16 %v132_v1, %v132_v1 }
  0x93   :  { %v174_v38 = vunpack.c.l.b16 %v141_v19  ;;  %v182_v44 = vunpack.c.l.b16 %v149_v30  ;;  %v1014_v30 = vld [vmem:[%s1386_s5 + $0x10] sm:$0xff] }
  0x94   :  { %v181_v34 = vunpack.c.l.b16 %v148_v15  ;;  %v1019_v15 = vld [vmem:[%s1386_s5 + $0x38] sm:$0xff] }
  0x95   :  { %v192_v51 = vperm.slane %v174_v38, %v1212_v2  ;;  %v200_v57 = vperm.slane %v182_v44, %v1212_v2  ;;  %443 = vmatpush.bf16.msra.mxu2 %v1019_v15  ;;  %v1021_v15 = vld [vmem:[%s1389_s8 + $0x8] sm:$0xff] }
  0x96   :  { %v116_v16 = vpop.xlane.xlu1 %115  ;;  %v95_v22 = vpop.xlane.xlu2 %94  ;;  %v199_v47 = vperm.slane %v181_v34, %v1212_v2 }
  0x97   :  { %v92_v17 = vpop.xlane.xlu0 %91  ;;  %v134_v20 = vmul.f32 0.015625, %v116_v16  ;;  %v127_v26 = vmul.f32 0.015625, %v95_v22  ;;  %v212_v62 = vsel %vm211_vm6, %v192_v51, %v210_v59 }
  0x98   :  { %v126_v21 = vmul.f32 0.015625, %v92_v17  ;;  %v220_v60 = vsel %vm209_vm5, %v199_v47, %v219_v56 }
  0x99   :  { %v150_v35 = vpack.c.bf16 %v134_v20, %v134_v20  ;;  %v143_v39 = vpack.c.bf16 %v127_v26, %v127_v26  ;;  %v221_v3 = vsel %vm211_vm6, %v200_v57, %v220_v60  ;;  %444 = vmatpush.bf16.msra.mxu2 %v1018_v18 }
  0x9a   :  { %v142_v31 = vpack.c.bf16 %v126_v21, %v126_v21  ;;  %v1017_v21 = vld [vmem:[%s1386_s5 + $0x28] sm:$0xff] }
  0x9b   :  { %v183_v48 = vunpack.c.l.b16 %v150_v35  ;;  %v176_v52 = vunpack.c.l.b16 %v143_v39  ;;  %v1012_v35 = vld [vmem:[%s1386_s5] sm:$0xff] }
  0x9c   :  { %v175_v41 = vunpack.c.l.b16 %v142_v31 }
  0x9d   :  { %v201_v61 = vperm.slane %v183_v48, %v1212_v2  ;;  %v194_v63 = vperm.slane %v176_v52, %v1212_v2  ;;  %445 = vmatpush.bf16.msra.mxu2 %v1017_v21  ;;  %v1044_v52 = vld [vmem:[%s1385_s4] ss:$0 sm:$0xff] }
  0x9e   :  { %v193_v55 = vperm.slane %v175_v41, %v1212_v2 }
  0x9f   :  { %v119_v49 = vpop.xlane.xlu0 %118  ;;  %v222_v5 = vsel %vm213_vm7, %v201_v61, %v221_v3  ;;  %v1027_v61 = vld [vmem:[%s1389_s8 + $0x38] sm:$0xff] }
  0xa0   :  { %v135_v53 = vmul.f32 0.015625, %v119_v49  ;;  %v214_v1 = vsel %vm213_vm7, %v193_v55, %v212_v62  ;;  %570 = vmatpush.bf16.msra.mxu3 %v1027_v61  ;;  %v1028_v61 = vld [vmem:[%s1391_s9] sm:$0xff] }
  0xa1   :  { %v216_v6 = vsel %vm215_vm8, %v194_v63, %v214_v1  ;;  %446 = vmatpush.bf16.msra.mxu2 %v1016_v24 }
  0xa2   :  { %v151_v58 = vpack.c.bf16 %v135_v53, %v135_v53 }
  0xa4   :  { %v184_v0 = vunpack.c.l.b16 %v151_v58 }
  0xa5   :  { %447 = vmatpush.bf16.msra.mxu2 %v1015_v27  ;;  %v457_v27 = vld [vmem:[%s1390_s6] sm:$0x1] }
  0xa6   :  { %v202_v4 = vperm.slane %v184_v0, %v1212_v2  ;;  %v1004_v2 = vld [vmem:[%s1384_s2] sm:$0xff]  ;;  %v1026_v0 = vld [vmem:[%s1389_s8 + $0x30] sm:$0xff] }
  0xa7   :  { %319 = vmatpush.bf16.msra.mxu1 %v1004_v2  ;;  %571 = vmatpush.bf16.msra.mxu3 %v1026_v0 }
  0xa8   :  { %v223_v7 = vsel %vm215_vm8, %v202_v4, %v222_v5  ;;  %v1025_v4 = vld [vmem:[%s1389_s8 + $0x28] sm:$0xff] }
  0xa9   :  { %v224_v8 = vpack.c.b16 %v223_v7, %v216_v6  ;;  %448 = vmatpush.bf16.msra.mxu2 %v1014_v30  ;;  %v1024_v7 = vld [vmem:[%s1389_s8 + $0x20] sm:$0xff] }
  0xab   :  { %843 = vmatmul.msk.bf16.vlgmr.msra.gmra.mxu0 %vm225_vm9, %v224_v8  ;;  %572 = vmatpush.bf16.msra.mxu3 %v1025_v4 }
  0xad   :  { %449 = vmatpush.bf16.msra.mxu2 %v1013_v33 }
  0xaf   :  { %573 = vmatpush.bf16.msra.mxu3 %v1024_v7 }
  0xb1   :  { %450 = vmatpush.bf16.msra.mxu2 %v1012_v35 }
  0xb3   :  { %574 = vmatpush.bf16.msra.mxu3 %v1023_v10 }
 0x128   :  { %v242_v11 = vpop.f32.mrf.mxu0 }
 0x130   :  { %v244_v12 = vpop.f32.mrf.mxu0 }
 0x131   :  { %v247_v13 = vpack.c.bf16 %v244_v12, %v242_v11  ;;  %v1022_v12 = vld [vmem:[%s1389_s8 + $0x10] sm:$0xff] }
 0x132   :  { %575 = vmatpush.bf16.msra.mxu3 %v1022_v12 }
 0x133   :  { %320 = vmatmul.bf16.vlgmr.msra.gmra.mxu1 %v247_v13 }
 0x136   :  { %576 = vmatpush.bf16.msra.mxu3 %v1021_v15 }
 0x1b0   :  { %v321_v14 = vpop.f32.mrf.mxu1 }
 0x1b1   :  { %v335_v16 = vrot.slane %v321_v14, 4 }
 0x1b3   :  { %v336_v17 = vadd.f32 %v335_v16, %v321_v14 }
 0x1b5   :  { %v337_v19 = vrot.slane %v336_v17, 2 }
 0x1b7   :  { %v338_v20 = vadd.f32 %v337_v19, %v336_v17  ;;  %v1020_v17 = vld [vmem:[%s1389_s8] sm:$0xff] }
 0x1b8   :  { %v323_v49 = vpop.f32.mrf.mxu1  ;;  %577 = vmatpush.bf16.msra.mxu3 %v1020_v17 }
 0x1b9   :  { %v339_v22 = vrot.slane %v338_v20, 1 }
 0x1bb   :  { %v340_v23 = vadd.f32 %v339_v22, %v338_v20 }
 0x1bd   :  { %v341_v25 = vmul.f32 0.125, %v340_v23 }
 0x1bf   :  { %v342_v26 = vsub.f32 %v321_v14, %v341_v25  ;;  %v343_v50 = vsub.f32 %v323_v49, %v341_v25  ;;  %v1032_v49 = vld [vmem:[%s1391_s9 + $0x20] sm:$0xff] }
 0x1c1   :  { %v346_v28 = vmul.f32 %v342_v26, %v342_v26 }
 0x1c3   :  { %v349_v29 = vrot.slane %v346_v28, 4 }
 0x1c5   :  { %v350_v31 = vadd.f32 %v349_v29, %v346_v28 }
 0x1c7   :  { %v351_v32 = vrot.slane %v350_v31, 2 }
 0x1c9   :  { %v352_v34 = vadd.f32 %v351_v32, %v350_v31 }
 0x1cb   :  { %v353_v36 = vrot.slane %v352_v34, 1 }
 0x1cd   :  { %v354_v37 = vadd.f32 %v353_v36, %v352_v34  ;;  %v1045_v34 = vld [vmem:[%s1388_s7] ss:$0 sm:$0xff] }
 0x1cf   :  { %v355_v38 = vmul.f32 0.125, %v354_v37 }
 0x1d1   :  { %v356_v39 = vadd.f32 1e-05, %v355_v38 }
 0x1d3   :  { %1048 = vrsqrt.f32 %v356_v39  ;;  %vm363_vm11 = vweird.f32 %v356_v39 }
 0x1d9   :  { %v1049_v40 = vpop.eup %1048 }
 0x1da   :  { %v358_v41 = vmul.f32 %v1049_v40, %v356_v39  ;;  %vm364_vm10 = vweird.f32 %v1049_v40 }
 0x1db   :  { %vm365_vm12 = vmor %vm363_vm11, %vm364_vm10 }
 0x1dc   :  { %v359_v42 = vmul.f32 %v1049_v40, %v358_v41 }
 0x1de   :  { %v360_v43 = vmul.f32 0.5, %v359_v42  ;;  %v1035_v42 = vld [vmem:[%s1391_s9 + $0x38] sm:$0xff] }
 0x1df   :  { %688 = vmatpush.bf16.msrb.mxu0 %v1035_v42 }
 0x1e0   :  { %v361_v44 = vsub.f32 1.5, %v360_v43  ;;  %v1034_v43 = vld [vmem:[%s1391_s9 + $0x30] sm:$0xff] }
 0x1e2   :  { %v362_v46 = vmul.f32 %v1049_v40, %v361_v44 }
 0x1e3   :  { %689 = vmatpush.bf16.msrb.mxu0 %v1034_v43 }
 0x1e4   :  { %v366_v47 = vsel %vm365_vm12, %v1049_v40, %v362_v46  ;;  %v1033_v46 = vld [vmem:[%s1391_s9 + $0x28] sm:$0xff] }
 0x1e5   :  { %v367_v48 = vmul.f32 %v366_v47, %v326_v45 }
 0x1e7   :  { %v368_v51 = vperm.slane %v367_v48, 0  ;;  %690 = vmatpush.bf16.msrb.mxu0 %v1033_v46 }
 0x1e9   :  { %v370_v53 = vmul.f32 %v368_v51, %v343_v50  ;;  %v369_v54 = vmul.f32 %v368_v51, %v342_v26 }
 0x1eb   :  { %v374_v55 = vadd.f32 %v1044_v52, %v369_v54  ;;  %v375_v56 = vadd.f32 %v1044_v52, %v370_v53  ;;  %691 = vmatpush.bf16.msrb.mxu0 %v1032_v49  ;;  %v1031_v52 = vld [vmem:[%s1391_s9 + $0x18] sm:$0xff] }
 0x1ed   :  { %v376_v57 = vmax.f32 %v374_v55, 0.0  ;;  %v377_v58 = vmax.f32 %v375_v56, 0.0  ;;  %v1030_v55 = vld [vmem:[%s1391_s9 + $0x10] sm:$0xff] }
 0x1ef   :  { %v378_v59 = vpack.c.bf16 %v377_v58, %v376_v57  ;;  %692 = vmatpush.bf16.msrb.mxu0 %v1031_v52  ;;  %v1029_v58 = vld [vmem:[%s1391_s9 + $0x8] sm:$0xff] }
 0x1f1   :  { %451 = vmatmul.bf16.vlgmr.msra.gmra.mxu2 %v378_v59 }
 0x1f3   :  { %693 = vmatpush.bf16.msrb.mxu0 %v1030_v55 }
 0x1f7   :  { %694 = vmatpush.bf16.msrb.mxu0 %v1029_v58 }
 0x1fb   :  { %695 = vmatpush.bf16.msrb.mxu0 %v1028_v61 }
 0x274   :  { %v452_v60 = vpop.f32.mrf.mxu2 }
 0x275   :  { %v462_v62 = vrot.slane %v452_v60, 4 }
 0x277   :  { %v463_v63 = vadd.f32 %v462_v62, %v452_v60 }
 0x279   :  { %v464_v1 = vrot.slane %v463_v63, 2 }
 0x27b   :  { %v465_v3 = vadd.f32 %v464_v1, %v463_v63 }
 0x27c   :  { %v454_v31 = vpop.f32.mrf.mxu2 }
 0x27d   :  { %v466_v5 = vrot.slane %v465_v3, 1 }
 0x27f   :  { %v467_v6 = vadd.f32 %v466_v5, %v465_v3 }
 0x281   :  { %v468_v8 = vmul.f32 0.125, %v467_v6 }
 0x283   :  { %v469_v9 = vsub.f32 %v452_v60, %v468_v8  ;;  %v470_v32 = vsub.f32 %v454_v31, %v468_v8 }
 0x285   :  { %v473_v2 = vmul.f32 %v469_v9, %v469_v9 }
 0x287   :  { %v476_v11 = vrot.slane %v473_v2, 4 }
 0x289   :  { %v477_v13 = vadd.f32 %v476_v11, %v473_v2 }
 0x28b   :  { %v478_v14 = vrot.slane %v477_v13, 2 }
 0x28d   :  { %v479_v16 = vadd.f32 %v478_v14, %v477_v13 }
 0x28f   :  { %v480_v18 = vrot.slane %v479_v16, 1 }
 0x291   :  { %v481_v19 = vadd.f32 %v480_v18, %v479_v16  ;;  %v1043_v18 = vld [vmem:[%s1395_s12 + $0x38] sm:$0xff] }
 0x292   :  { %819 = vmatpush.bf16.msrb.mxu1 %v1043_v18 }
 0x293   :  { %v482_v20 = vmul.f32 0.125, %v481_v19 }
 0x295   :  { %v483_v21 = vadd.f32 1e-05, %v482_v20 }
 0x297   :  { %1050 = vrsqrt.f32 %v483_v21  ;;  %vm490_vm14 = vweird.f32 %v483_v21 }
 0x29d   :  { %v1051_v22 = vpop.eup %1050 }
 0x29e   :  { %v485_v23 = vmul.f32 %v1051_v22, %v483_v21  ;;  %vm491_vm13 = vweird.f32 %v1051_v22  ;;  %v1042_v21 = vld [vmem:[%s1395_s12 + $0x30] sm:$0xff] }
 0x29f   :  { %vm492_vm15 = vmor %vm490_vm14, %vm491_vm13  ;;  %820 = vmatpush.bf16.msrb.mxu1 %v1042_v21 }
 0x2a0   :  { %v486_v24 = vmul.f32 %v1051_v22, %v485_v23 }
 0x2a2   :  { %v487_v25 = vmul.f32 0.5, %v486_v24  ;;  %v1041_v24 = vld [vmem:[%s1395_s12 + $0x28] sm:$0xff] }
 0x2a3   :  { %821 = vmatpush.bf16.msrb.mxu1 %v1041_v24 }
 0x2a4   :  { %v488_v26 = vsub.f32 1.5, %v487_v25 }
 0x2a6   :  { %v489_v28 = vmul.f32 %v1051_v22, %v488_v26 }
 0x2a8   :  { %v493_v29 = vsel %vm492_vm15, %v1051_v22, %v489_v28 }
 0x2a9   :  { %v494_v30 = vmul.f32 %v493_v29, %v457_v27  ;;  %v1040_v27 = vld [vmem:[%s1395_s12 + $0x20] sm:$0xff] }
 0x2aa   :  { %822 = vmatpush.bf16.msrb.mxu1 %v1040_v27 }
 0x2ab   :  { %v495_v33 = vperm.slane %v494_v30, 0  ;;  %v1039_v30 = vld [vmem:[%s1395_s12 + $0x18] sm:$0xff] }
 0x2ad   :  { %v497_v35 = vmul.f32 %v495_v33, %v470_v32  ;;  %v496_v36 = vmul.f32 %v495_v33, %v469_v9  ;;  %v1038_v33 = vld [vmem:[%s1395_s12 + $0x10] sm:$0xff] }
 0x2ae   :  { %823 = vmatpush.bf16.msrb.mxu1 %v1039_v30 }
 0x2af   :  { %v501_v37 = vadd.f32 %v1045_v34, %v496_v36  ;;  %v502_v38 = vadd.f32 %v1045_v34, %v497_v35  ;;  %v1037_v36 = vld [vmem:[%s1395_s12 + $0x8] sm:$0xff] }
 0x2b1   :  { %v503_v39 = vmax.f32 %v501_v37, 0.0  ;;  %v504_v40 = vmax.f32 %v502_v38, 0.0 }
 0x2b2   :  { %824 = vmatpush.bf16.msrb.mxu1 %v1038_v33 }
 0x2b3   :  { %v505_v41 = vpack.c.bf16 %v504_v40, %v503_v39  ;;  %v1036_v39 = vld [vmem:[%s1395_s12] sm:$0xff] }
 0x2b5   :  { %578 = vmatmul.bf16.vlgmr.msra.gmra.mxu3 %v505_v41 }
 0x2b6   :  { %825 = vmatpush.bf16.msrb.mxu1 %v1037_v36 }
 0x2ba   :  { %826 = vmatpush.bf16.msrb.mxu1 %v1036_v39 }
 0x338   :  { %v579_v44 = vpop.f32.mrf.mxu3 }
 0x339   :  { %v587_v45 = vrot.slane %v579_v44, 4 }
 0x33b   :  { %v588_v47 = vadd.f32 %v587_v45, %v579_v44 }
 0x33d   :  { %v589_v48 = vrot.slane %v588_v47, 2 }
 0x33f   :  { %v590_v50 = vadd.f32 %v589_v48, %v588_v47  ;;  %v702_v47 = vld [vmem:[%s1396_s10] sm:$0x1] }
 0x340   :  { %v581_v10 = vpop.f32.mrf.mxu3 }
 0x341   :  { %v591_v51 = vrot.slane %v590_v50, 1 }
 0x343   :  { %v592_v53 = vadd.f32 %v591_v51, %v590_v50 }
 0x345   :  { %v593_v54 = vmul.f32 0.125, %v592_v53 }
 0x347   :  { %v594_v56 = vsub.f32 %v579_v44, %v593_v54  ;;  %v595_v11 = vsub.f32 %v581_v10, %v593_v54  ;;  %v1046_v54 = vld [vmem:[%s1393_s11] ss:$0 sm:$0xff] }
 0x349   :  { %v598_v57 = vmul.f32 %v594_v56, %v594_v56 }
 0x34b   :  { %v601_v59 = vrot.slane %v598_v57, 4 }
 0x34d   :  { %v602_v60 = vadd.f32 %v601_v59, %v598_v57 }
 0x34f   :  { %v603_v62 = vrot.slane %v602_v60, 2 }
 0x351   :  { %v604_v63 = vadd.f32 %v603_v62, %v602_v60  ;;  %v1047_v62 = vld [vmem:[%s1394_s13] ss:$0 sm:$0xff] }
 0x353   :  { %v605_v0 = vrot.slane %v604_v63, 1 }
 0x355   :  { %v606_v1 = vadd.f32 %v605_v0, %v604_v63 }
 0x357   :  { %v607_v3 = vmul.f32 0.125, %v606_v1 }
 0x359   :  { %v608_v4 = vadd.f32 1e-05, %v607_v3 }
 0x35b   :  { %1052 = vrsqrt.f32 %v608_v4  ;;  %vm615_vm1 = vweird.f32 %v608_v4 }
 0x361   :  { %v1053_v5 = vpop.eup %1052 }
 0x362   :  { %v610_v6 = vmul.f32 %v1053_v5, %v608_v4  ;;  %vm616_vm0 = vweird.f32 %v1053_v5 }
 0x363   :  { %vm617_vm2 = vmor %vm615_vm1, %vm616_vm0 }
 0x364   :  { %v611_v7 = vmul.f32 %v1053_v5, %v610_v6 }
 0x366   :  { %v612_v8 = vmul.f32 0.5, %v611_v7 }
 0x368   :  { %v613_v9 = vsub.f32 1.5, %v612_v8 }
 0x36a   :  { %v614_v2 = vmul.f32 %v1053_v5, %v613_v9 }
 0x36c   :  { %v618_v12 = vsel %vm617_vm2, %v1053_v5, %v614_v2 }
 0x36d   :  { %v619_v13 = vmul.f32 %v618_v12, %v594_v56  ;;  %v620_v14 = vmul.f32 %v618_v12, %v595_v11 }
 0x36f   :  { %621 = vst [vmem:[%s1392_s14] sm:$0xff] %v619_v13  ;;  %v623_v15 = vpack.c.bf16 %v620_v14, %v619_v13 }
 0x370   :  { %622 = vst [vmem:[%s1392_s14 + $0x8] sm:$0xff] %v620_v14 }
 0x371   :  { %696 = vmatmul.bf16.vlgmr.msrb.gmra.mxu0 %v623_v15 }
 0x3ee   :  { %v697_v16 = vpop.f32.mrf.mxu0 }
 0x3ef   :  { %v707_v17 = vrot.slane %v697_v16, 4 }
 0x3f1   :  { %v708_v19 = vadd.f32 %v707_v17, %v697_v16 }
 0x3f3   :  { %v709_v20 = vrot.slane %v708_v19, 2 }
 0x3f5   :  { %v710_v22 = vadd.f32 %v709_v20, %v708_v19 }
 0x3f6   :  { %v699_v51 = vpop.f32.mrf.mxu0 }
 0x3f7   :  { %v711_v23 = vrot.slane %v710_v22, 1 }
 0x3f9   :  { %v712_v25 = vadd.f32 %v711_v23, %v710_v22 }
 0x3fb   :  { %v713_v26 = vmul.f32 0.125, %v712_v25 }
 0x3fd   :  { %v714_v28 = vsub.f32 %v697_v16, %v713_v26  ;;  %v715_v52 = vsub.f32 %v699_v51, %v713_v26 }
 0x3ff   :  { %v718_v29 = vmul.f32 %v714_v28, %v714_v28 }
 0x401   :  { %v721_v31 = vrot.slane %v718_v29, 4 }
 0x403   :  { %v722_v32 = vadd.f32 %v721_v31, %v718_v29 }
 0x405   :  { %v723_v34 = vrot.slane %v722_v32, 2 }
 0x407   :  { %v724_v35 = vadd.f32 %v723_v34, %v722_v32 }
 0x409   :  { %v725_v37 = vrot.slane %v724_v35, 1 }
 0x40b   :  { %v726_v38 = vadd.f32 %v725_v37, %v724_v35 }
 0x40d   :  { %v727_v40 = vmul.f32 0.125, %v726_v38 }
 0x40f   :  { %v728_v41 = vadd.f32 1e-05, %v727_v40 }
 0x411   :  { %1054 = vrsqrt.f32 %v728_v41  ;;  %vm735_vm4 = vweird.f32 %v728_v41 }
 0x417   :  { %v1055_v42 = vpop.eup %1054 }
 0x418   :  { %v730_v43 = vmul.f32 %v1055_v42, %v728_v41  ;;  %vm736_vm3 = vweird.f32 %v1055_v42 }
 0x419   :  { %vm737_vm5 = vmor %vm735_vm4, %vm736_vm3 }
 0x41a   :  { %v731_v44 = vmul.f32 %v1055_v42, %v730_v43 }
 0x41c   :  { %v732_v45 = vmul.f32 0.5, %v731_v44 }
 0x41e   :  { %v733_v46 = vsub.f32 1.5, %v732_v45 }
 0x420   :  { %v734_v48 = vmul.f32 %v1055_v42, %v733_v46 }
 0x422   :  { %v738_v49 = vsel %vm737_vm5, %v1055_v42, %v734_v48 }
 0x423   :  { %v739_v50 = vmul.f32 %v738_v49, %v702_v47 }
 0x425   :  { %v740_v53 = vperm.slane %v739_v50, 0 }
 0x427   :  { %v741_v55 = vmul.f32 %v740_v53, %v714_v28  ;;  %v742_v56 = vmul.f32 %v740_v53, %v715_v52 }
 0x429   :  { %v747_v57 = vadd.f32 %v1046_v54, %v742_v56  ;;  %v746_v58 = vadd.f32 %v1046_v54, %v741_v55 }
 0x42b   :  { %v749_v59 = vmax.f32 %v747_v57, 0.0  ;;  %v748_v60 = vmax.f32 %v746_v58, 0.0 }
 0x42d   :  { %v750_v61 = vpack.c.bf16 %v749_v59, %v748_v60 }
 0x42f   :  { %827 = vmatmul.bf16.vlgmr.msrb.gmra.mxu1 %v750_v61 }
 0x4ac   :  { %v828_v63 = vpop.f32.mrf.mxu1 }
 0x4ad   :  { %v829_v0 = vadd.f32 %v1047_v62, %v828_v63 }
 0x4af   :  { %833 = vst [vmem:[%s1397_s15] sm:$0xff] %v829_v0 }
 0x4b4   :  { %v830_v1 = vpop.f32.mrf.mxu1 }
 0x4b5   :  { %v831_v3 = vadd.f32 %v1047_v62, %v830_v1 }
 0x4b7   :  { %834 = vst [vmem:[%s1397_s15 + $0x8] sm:$0xff] %v831_v3 }

</bundles_post_ra>
